<compile_context>
chip_gen: v7x
topology: tpu7x:2x2x1
jax: 0.10.0
libtpu: 0.0.40
codegen_flags: <defaults>
</compile_context>

<pallas_src>
import functools

import jax
import jax.numpy as jnp
from jax.experimental import pallas as pl
from jax.experimental.pallas import tpu as pltpu


def _round_up(x, m):
    return ((x + m - 1) // m) * m


_VMEM_BUDGET = 24 * 1024 * 1024   # target double-buffered working set
_VMEM_LIMIT = 40 * 1024 * 1024    # scoped-VMEM limit (v5e default is 16 MiB)


# ---- fused kernel: whole K and E resident, 1-D grid over M ----------------
def _patch_embed_kernel_fused(x_ref, w_ref, b_ref, o_ref):
    # Single K step: write the output directly (no accumulator scratch).
    o_ref[...] = (
        jnp.dot(x_ref[...], w_ref[...], preferred_element_type=jnp.float32)
        + b_ref[...]
    ).astype(o_ref.dtype)


# ---- fallback kernel: 3-D grid with f32 accumulator (large K or E) --------
def _patch_embed_kernel_acc(x_ref, w_ref, b_ref, o_ref, acc_ref):
    k = pl.program_id(2)

    @pl.when(k == 0)
    def _():
        acc_ref[...] = jnp.zeros_like(acc_ref)

    acc_ref[...] += jnp.dot(x_ref[...], w_ref[...],
                            preferred_element_type=jnp.float32)

    @pl.when(k == pl.num_programs(2) - 1)
    def _():
        o_ref[...] = (acc_ref[...] + b_ref[...]).astype(o_ref.dtype)


def patch_embedding(im, weight, bias, patch_size, *,
                    compute_dtype=jnp.bfloat16, out_dtype=None):
    """Equivalent of PatchEmbedding.forward.

    im:     (B, C, H, W)  NCHW (PyTorch convention)
    weight: (E, C, P, P)  nn.Conv2d weight layout
    bias:   (E,)
    returns (B, num_patches, E)
    """
    B, C, H, W = im.shape
    P = patch_size
    if H % P != 0 or W % P != 0:
        raise ValueError("image dimensions must be divisible by the patch size")
    GH, GW = H // P, W // P
    N = GH * GW
    E = weight.shape[0]
    K = C * P * P
    M = B * N

    if compute_dtype is None:
        compute_dtype = im.dtype
    if out_dtype is None:
        out_dtype = im.dtype

    x_bytes = jnp.dtype(compute_dtype).itemsize
    w_bytes = x_bytes
    o_bytes = jnp.dtype(out_dtype).itemsize

    # Cast BEFORE patch extraction so any materialized intermediate is the
    # narrow dtype.  Rows flattened in (C, kh, kw) order to match Conv2d.
    x = im.astype(compute_dtype).reshape(B, C, GH, P, GW, P)
    x = jnp.transpose(x, (0, 2, 4, 1, 3, 5)).reshape(M, K)

    # TODO(synk): in a real model pre-materialize the (K, E) weight once
    # (it is a jit constant here, so XLA folds the transpose anyway).
    w = weight.reshape(E, K).T.astype(compute_dtype)    # (K, E)
    b = bias.reshape(1, E).astype(jnp.float32)          # bias added in f32

    M8 = _round_up(M, 8)
    K_pad = _round_up(K, 128)
    E_pad = _round_up(E, 128)

    # Collapse E/K grid axes whenever W (+bias) fits comfortably in VMEM.
    fuse = (K_pad <= 2048 and E_pad <= 1536
            and 2 * K_pad * E_pad * w_bytes <= 16 * 1024 * 1024)

    if fuse:
        tn, tk = E_pad, K_pad
        fixed = 2 * K_pad * E_pad * w_bytes + 2 * E_pad * 4
        tm = 8
        for cand in (1024, 512, 256, 128, 64, 32, 16, 8):
            if cand > M8:
                continue
            ws = fixed + 2 * cand * (K_pad * x_bytes + E_pad * o_bytes)
            if ws <= _VMEM_BUDGET:
                tm = cand
                break
        M_pad = _round_up(M8, tm)
    else:
        tm = min(256, M8)
        tn = min(256, E_pad)
        tk = min(512, K_pad)
        M_pad = _round_up(M8, tm)
        E_pad = _round_up(E_pad, tn)
        K_pad = _round_up(K_pad, tk)

    if (M_pad, K_pad) != (M, K):
        x = jnp.pad(x, ((0, M_pad - M), (0, K_pad - K)))
    if (K_pad, E_pad) != (K, E):
        w = jnp.pad(w, ((0, K_pad - K), (0, E_pad - E)))
    if E_pad != E:
        b = jnp.pad(b, ((0, 0), (0, E_pad - E)))

    cost = pl.CostEstimate(
        flops=2 * M_pad * K_pad * E_pad,
        transcendentals=0,
        bytes_accessed=int(M_pad * K_pad * x_bytes + K_pad * E_pad * w_bytes
                           + E_pad * 4 + M_pad * E_pad * o_bytes),
    )

    if fuse:
        out = pl.pallas_call(
            _patch_embed_kernel_fused,
            out_shape=jax.ShapeDtypeStruct((M_pad, E_pad), out_dtype),
            grid=(M_pad // tm,),
            in_specs=[
                pl.BlockSpec((tm, K_pad), lambda i: (i, 0)),      # X streams
                pl.BlockSpec((K_pad, E_pad), lambda i: (0, 0)),   # W resident
                pl.BlockSpec((1, E_pad), lambda i: (0, 0)),       # bias resident
            ],
            out_specs=pl.BlockSpec((tm, E_pad), lambda i: (i, 0)),
            compiler_params=pltpu.CompilerParams(
                dimension_semantics=("parallel",),
                vmem_limit_bytes=_VMEM_LIMIT,
            ),
            cost_estimate=cost,
        )(x, w, b)
    else:
        grid = (M_pad // tm, E_pad // tn, K_pad // tk)
        out = pl.pallas_call(
            _patch_embed_kernel_acc,
            out_shape=jax.ShapeDtypeStruct((M_pad, E_pad), out_dtype),
            grid=grid,
            in_specs=[
                pl.BlockSpec((tm, tk), lambda i, j, k: (i, k)),
                pl.BlockSpec((tk, tn), lambda i, j, k: (k, j)),
                pl.BlockSpec((1, tn), lambda i, j, k: (0, j)),
            ],
            out_specs=pl.BlockSpec((tm, tn), lambda i, j, k: (i, j)),
            scratch_shapes=[pltpu.VMEM((tm, tn), jnp.float32)],
            compiler_params=pltpu.CompilerParams(
                dimension_semantics=("parallel", "parallel", "arbitrary"),
                vmem_limit_bytes=_VMEM_LIMIT,
            ),
            cost_estimate=cost,
        )(x, w, b)

    return out[:M, :E].reshape(B, N, E)


if __name__ == "__main__":
    # Small shapes consistent with the module.
    B, C, H, W = 2, 4, 16, 16
    patch_size = 4
    embed_dim = 32

    key = jax.random.PRNGKey(0)
    k_im, k_w, k_b = jax.random.split(key, 3)

    im = jax.random.normal(k_im, (B, C, H, W), dtype=jnp.float32)
    weight = jax.random.normal(
        k_w, (embed_dim, C, patch_size, patch_size), dtype=jnp.float32) * 0.05
    bias = jax.random.normal(k_b, (embed_dim,), dtype=jnp.float32) * 0.05

    num_patches = (H // patch_size) * (W // patch_size)

    # Pure-JAX reference (lax conv == nn.Conv2d with kernel=stride=P).
    ref = jax.lax.conv_general_dilated(
        im, weight, window_strides=(patch_size, patch_size), padding="VALID",
        dimension_numbers=("NCHW", "OIHW", "NCHW"))
    ref = ref + bias.reshape(1, embed_dim, 1, 1)
    ref = ref.reshape(B, embed_dim, num_patches).transpose(0, 2, 1)

    # Default path: bf16 MXU inputs, f32 accumulation (loose tolerance).
    fn_bf16 = jax.jit(functools.partial(patch_embedding, patch_size=patch_size))
    out_bf16 = jax.block_until_ready(fn_bf16(im, weight, bias))
    assert out_bf16.shape == (B, num_patches, embed_dim), out_bf16.shape
    assert jnp.allclose(out_bf16, ref, atol=5e-2, rtol=5e-2)

    # Strict f32 path (tight tolerance).
    fn_f32 = jax.jit(functools.partial(
        patch_embedding, patch_size=patch_size, compute_dtype=jnp.float32))
    out_f32 = jax.block_until_ready(fn_f32(im, weight, bias))
    assert out_f32.shape == (B, num_patches, embed_dim), out_f32.shape
    assert jnp.allclose(out_f32, ref, atol=1e-4, rtol=1e-4)

    print("KERNEL_OK")
</pallas_src>

<mosaic_0001>
module attributes {stable_mosaic.version = 11 : i64} {
  func.func @_patch_embed_kernel_fused(%arg0: i32, %arg1: memref<32x128xbf16, #tpu.memory_space<vmem>>, %arg2: memref<128x128xbf16, #tpu.memory_space<vmem>>, %arg3: memref<1x128xf32, #tpu.memory_space<vmem>>, %arg4: memref<32x128xf32, #tpu.memory_space<vmem>>) attributes {dimension_semantics = [#tpu.dimension_semantics<parallel>], iteration_bounds = array<i64: 1>, scalar_prefetch = 0 : i64, scratch_operands = 0 : i64, tpu.core_type = #tpu.core_type<tc>, window_params = [{transform_indices = @transform_0, window_bounds = array<i64: 32, 128>}, {pipeline_mode = #tpu.pipeline_mode<synchronous>, transform_indices = @transform_1, window_bounds = array<i64: 128, 128>}, {pipeline_mode = #tpu.pipeline_mode<synchronous>, transform_indices = @transform_2, window_bounds = array<i64: 1, 128>}, {transform_indices = @transform_3, window_bounds = array<i64: 32, 128>}]} {
    %c0 = arith.constant 0 : index
    %c0_0 = arith.constant 0 : index
    %0 = vector.load %arg1[%c0, %c0_0] : memref<32x128xbf16, #tpu.memory_space<vmem>>, vector<32x128xbf16>
    %c0_1 = arith.constant 0 : index
    %c0_2 = arith.constant 0 : index
    %1 = vector.load %arg2[%c0_1, %c0_2] : memref<128x128xbf16, #tpu.memory_space<vmem>>, vector<128x128xbf16>
    %cst = arith.constant dense<0.000000e+00> : vector<32x128xf32>
    %2 = tpu.matmul %0, %1, %cst {dimension_numbers = #tpu.dot_dimension_numbers<[1], [0], [0], [1], [0, 0, 1, 1], [], []>} : vector<32x128xbf16>, vector<128x128xbf16>, vector<32x128xf32> -> vector<32x128xf32>
    %c0_3 = arith.constant 0 : index
    %c0_4 = arith.constant 0 : index
    %3 = vector.load %arg3[%c0_3, %c0_4] : memref<1x128xf32, #tpu.memory_space<vmem>>, vector<1x128xf32>
    %4 = vector.broadcast %3 : vector<1x128xf32> to vector<32x128xf32>
    %5 = arith.addf %2, %4 : vector<32x128xf32>
    %c0_5 = arith.constant 0 : index
    %c0_6 = arith.constant 0 : index
    %6 = vector.load %arg4[%c0_5, %c0_6] : memref<32x128xf32, #tpu.memory_space<vmem>>, vector<32x128xf32>
    tpu.vector_store %arg4[%c0_5, %c0_6], %5 {strides = array<i32>} : memref<32x128xf32, #tpu.memory_space<vmem>>, vector<32x128xf32>,
    return
  }
  func.func @transform_0(%arg0: i32) -> (i32, i32) {
    %c0_i32 = arith.constant 0 : i32
    %c0_i32_0 = arith.constant 0 : i32
    return %arg0, %c0_i32 : i32, i32
  }
  func.func @transform_1(%arg0: i32) -> (i32, i32) {
    %c0_i32 = arith.constant 0 : i32
    %c0_i32_0 = arith.constant 0 : i32
    %c0_i32_1 = arith.constant 0 : i32
    return %c0_i32, %c0_i32_0 : i32, i32
  }
  func.func @transform_2(%arg0: i32) -> (i32, i32) {
    %c0_i32 = arith.constant 0 : i32
    %c0_i32_0 = arith.constant 0 : i32
    %c0_i32_1 = arith.constant 0 : i32
    return %c0_i32, %c0_i32_0 : i32, i32
  }
  func.func @transform_3(%arg0: i32) -> (i32, i32) {
    %c0_i32 = arith.constant 0 : i32
    %c0_i32_0 = arith.constant 0 : i32
    return %arg0, %c0_i32 : i32, i32
  }
}

</mosaic_0001>

<bundles_post_ra>
// kernel: patch_embedding.1
= control target key start
LH: loop header
LB: loop body
LE: loop exit
PB: predicated region body
PF: predicated region fallthrough
CT: control target
= control target key end

     0   :  { %s318_s0 = inlined_call_operand.vmem [shape: bf16[32,128], index: 0, kind: input, shape index: {}]   ;;  %s319_s1 = inlined_call_operand.vmem [shape: bf16[128,128], index: 1, kind: input, shape index: {}]   ;;  %s320_s2 = inlined_call_operand.vmem [shape: f32[1,128], index: 2, kind: input, shape index: {}]   ;;  %s321_s3 = inlined_call_operand.hbm [shape: f32[32,128], index: 3, kind: output, shape index: {}]  }
   0x1   :  { %v216_v0 = vld [vmem:[%s319_s1] sm:$0xff]   ;;  %v217_v1 = vld [vmem:[%s319_s1 + $0x8] sm:$0xff]   ;;  %v218_v2 = vld [vmem:[%s319_s1 + $0x10] sm:$0xff]  }
   0x2   :  { %193 = vmatprep.subr.bf16.mxu0 %v216_v0  ;;  %v219_v3 = vld [vmem:[%s319_s1 + $0x18] sm:$0xff]   ;;  %v224_v4 = vld [vmem:[%s318_s0] sm:$0xff]  }
   0x3   :  { %194 = vmatpush3.bf16.msra.mxu0 %v216_v0  ;;  %209 = vmatprep.mubr.bf16.mxu0 %v224_v4 }
   0x4   :  { %195 = vmatprep.subr.bf16.mxu0 %v217_v1 }
   0x7   :  { %196 = vmatpush3.bf16.msra.mxu0 %v217_v1 }
   0x8   :  { %197 = vmatprep.subr.bf16.mxu0 %v218_v2 }
   0x9   :  { %8 = vsyncpa [#allocation3], 0  ;;  %v220_v5 = vld [vmem:[%s319_s1 + $0x20] sm:$0xff]   ;;  %v221_v6 = vld [vmem:[%s319_s1 + $0x28] sm:$0xff]   ;;  %s250_s7 = smov [#allocation2]  }
   0xa   :  { %v222_v7 = vld [vmem:[%s319_s1 + $0x30] sm:$0xff]   ;;  %v223_v8 = vld [vmem:[%s319_s1 + $0x38] sm:$0xff]   ;;  %v225_v9 = vld [vmem:[%s318_s0 + $0x8] sm:$0xff]   ;;  %s161_s8 = sshll.u32 %s250_s7, 4  ;;  %s162_s8 = int_to_ptr.vmem [resolvable:$true] %s161_s8 }
   0xb   :  { %198 = vmatpush3.bf16.msra.mxu0 %v218_v2  ;;  %v172_v10 = vld [vmem:[%s320_s2] ss:$0 sm:$0xff]  ;;  %s226_s0 = scalar_lea.vmem %s162_s8, 512  ;;  %p231_p1 = scmp.lt.s32.totalorder %s162_s8, %s162_s8 }
   0xc   :  { %199 = vmatprep.subr.bf16.mxu0 %v219_v3  ;;  %p227_p0 = scmp.ne.s32.totalorder %s162_s8, %s226_s0  ;;  %p232_p2 = scmp.lt.s32.totalorder %s226_s0, %s226_s0 }
   0xe   :  { %p233_p3 = por %p232_p2, %p231_p1 }
   0xf   :  { %200 = vmatpush3.bf16.msra.mxu0 %v219_v3 }
  0x10   :  { %201 = vmatprep.subr.bf16.mxu0 %v220_v5  ;;  %p234_p4 = pnand %p233_p3, %p227_p0 }
  0x13   :  { %202 = vmatpush3.bf16.msra.mxu0 %v220_v5 }
  0x14   :  { %203 = vmatprep.subr.bf16.mxu0 %v221_v6 }
  0x17   :  { %204 = vmatpush3.bf16.msra.mxu0 %v221_v6 }
  0x18   :  { %205 = vmatprep.subr.bf16.mxu0 %v222_v7 }
  0x1b   :  { %206 = vmatpush3.bf16.msra.mxu0 %v222_v7 }
  0x1c   :  { %207 = vmatprep.subr.bf16.mxu0 %v223_v8 }
  0x1f   :  { %208 = vmatpush3.bf16.msra.mxu0 %v223_v8 }
  0x22   :  { %210 = vmatmul.mubr.bf16.vlgmr.msra.gmra.mrb[0].mxu0 %v225_v9 }
  0xf5   :  { %v211_v11 = vpop.f32.mrb[0].mxu0 }
  0xf6   :  { %v146_v12 = vadd.f32 %v211_v11, %v172_v10  ;;  %v137_v13 = vpop.f32.mrb[1].mxu0 }
  0xf7   :  { %v138_v14 = vadd.f32 %v172_v10, %v137_v13  ;;  %v212_v15 = vpop.f32.mrb[2].mxu0 }
  0xf8   :  { %154 = vst [vmem:[#allocation2 + $0x10] sm:$0xff] %v146_v12  ;;  %v149_v16 = vadd.f32 %v212_v15, %v172_v10  ;;  %v140_v17 = vpop.f32.mrb[3].mxu0 }
  0xf9   :  { %152 = vst [vmem:[#allocation2] sm:$0xff] %v138_v14  ;;  %v141_v18 = vadd.f32 %v172_v10, %v140_v17 }
  0xfa   :  { %155 = vst [vmem:[#allocation2 + $0x18] sm:$0xff] %v149_v16 }
  0xfb   :  { %153 = vst [vmem:[#allocation2 + $0x8] sm:$0xff] %v141_v18 }
  0xfc   :  { %237 = shalt.err (!%p234_p4)
}
  0xfd   :  { %s238_s9 = scalar_lea.hbm %s321_s3, 512 }
  0xfe   :  { %p239_p5 = scmp.ne.s32.totalorder %s321_s3, %s238_s9  ;;  %p242_p6 = scmp.lt.u32.totalorder %s238_s9, %s321_s3 }
 0x100   :  { %p244_p7 = pnand %p242_p6, %p239_p5 }
 0x102   :  { %247 = shalt.err (!%p244_p7)
}
 0x103   :  { %s251_s14 = smov 128   ;;  %s252_s15 = smov 8  }
 0x104   :  { %167 = dma.vmem_to_hbm [thread:$0]  %s162_s8, 512, %s321_s3, [#allocation3], %s251_s14, %s251_s14, %s252_s15  }
 0x105   :  { %248 = dma.done.wait [#allocation3], 512  }
 0x106   :  { %249 = vsyncadd [#allocation3], 4294966784 }
 0x107   :  { %171 = vsyncpa [#allocation3], 1 }

</bundles_post_ra>
